<compile_context>
chip_gen: v7x
topology: tpu7x:2x2x1
jax: 0.10.0
libtpu: 0.0.40
codegen_flags: <defaults>
</compile_context>

<pallas_src>
import jax
import jax.numpy as jnp
from jax.experimental import pallas as pl
from jax.experimental.pallas import tpu as pltpu


def _affine_kernel(w_ref, b_ref, x_ref, o_ref):
    # w_ref, b_ref: SMEM refs of shape (1,) -> scalar parameters.
    # x_ref, o_ref: VMEM tiles of shape (tm, tn); one VPU fused multiply-add.
    w = w_ref[0]
    b = b_ref[0]
    o_ref[...] = w * x_ref[...] + b


def _choose_tiles(n, d, itemsize, tile_bytes=4 << 20):
    """Pick (tm, tn): ~tile_bytes per tile, (8,128)-aligned or full-extent."""
    # Lane (last) dim: keep full extent (lane-dense, unmasked stores) unless an
    # 8-row slab at full width would already blow the budget AND the width
    # tiles cleanly into 128-lane chunks.
    if d * itemsize * 8 <= tile_bytes or d % 128 != 0:
        tn = d
    else:
        tn = min(d, max(128, (tile_bytes // (8 * itemsize)) // 128 * 128))
    # Sublane (row) dim: fill ~tile_bytes worth of rows, 8-aligned, or all rows.
    tm = max(1, tile_bytes // (tn * itemsize))
    if tm >= n:
        tm = n                                   # single full-extent block
    else:
        tm = min(n, max(8, (tm // 8) * 8))       # sublane-aligned row tile
    return tm, tn


def linear_regression_forward(x: jax.Array, weight: jax.Array, bias: jax.Array) -> jax.Array:
    """y = weight * x + bias, with weight/bias of shape (1,); any x shape."""
    orig_shape = x.shape
    x2 = x.reshape(1, -1) if x.ndim == 1 else x.reshape(-1, orig_shape[-1])
    n, d = x2.shape

    tm, tn = _choose_tiles(n, d, x2.dtype.itemsize)
    grid = (pl.cdiv(n, tm), pl.cdiv(d, tn))

    y2 = pl.pallas_call(
        _affine_kernel,
        out_shape=jax.ShapeDtypeStruct((n, d), x2.dtype),
        grid_spec=pltpu.PrefetchScalarGridSpec(
            num_scalar_prefetch=0,
            grid=grid,
            in_specs=[
                pl.BlockSpec(memory_space=pltpu.SMEM),             # weight (1,)
                pl.BlockSpec(memory_space=pltpu.SMEM),             # bias   (1,)
                pl.BlockSpec((tm, tn), lambda i, j: (i, j)),       # x tile
            ],
            out_specs=pl.BlockSpec((tm, tn), lambda i, j: (i, j)),  # y tile
        ),
        compiler_params=pltpu.CompilerParams(
            dimension_semantics=("parallel", "parallel"),
            vmem_limit_bytes=48 * 1024 * 1024,
        ),
    )(weight, bias, x2)
    return y2.reshape(orig_shape)


if __name__ == "__main__":
    key = jax.random.PRNGKey(0)
    kx, kw, kb, kx2 = jax.random.split(key, 4)

    # Deterministic parameters matching nn.Parameter(torch.randn(1)) shapes.
    weight = jax.random.normal(kw, (1,), dtype=jnp.float32)
    bias = jax.random.normal(kb, (1,), dtype=jnp.float32)

    # Small lane-dense demo input -> collapses to a single full-array block.
    x = jax.random.normal(kx, (64, 128), dtype=jnp.float32)
    y = jax.block_until_ready(linear_regression_forward(x, weight, bias))
    y_ref = weight[0] * x + bias[0]
    assert y.shape == x.shape and y.dtype == x.dtype
    assert jnp.allclose(y, y_ref, atol=1e-6, rtol=1e-6)

    # Non-(8,128)-aligned shape exercises the full-extent-block fallback path.
    x_odd = jax.random.normal(kx2, (50, 10), dtype=jnp.float32)
    y_odd = jax.block_until_ready(linear_regression_forward(x_odd, weight, bias))
    assert jnp.allclose(y_odd, weight[0] * x_odd + bias[0], atol=1e-6, rtol=1e-6)

    print("KERNEL_OK")
</pallas_src>

<mosaic_0001>
module attributes {stable_mosaic.version = 11 : i64} {
  func.func @_affine_kernel(%arg0: i32, %arg1: i32, %arg2: memref<1xf32, #tpu.memory_space<smem>>, %arg3: memref<1xf32, #tpu.memory_space<smem>>, %arg4: memref<64x128xf32, #tpu.memory_space<vmem>>, %arg5: memref<64x128xf32, #tpu.memory_space<vmem>>) attributes {dimension_semantics = [#tpu.dimension_semantics<parallel>, #tpu.dimension_semantics<parallel>], iteration_bounds = array<i64: 1, 1>, scalar_prefetch = 0 : i64, scratch_operands = 0 : i64, tpu.core_type = #tpu.core_type<tc>, window_params = [{transform_indices = @transform_0, window_bounds = array<i64: 1>}, {transform_indices = @transform_1, window_bounds = array<i64: 1>}, {transform_indices = @transform_2, window_bounds = array<i64: 64, 128>}, {transform_indices = @transform_3, window_bounds = array<i64: 64, 128>}]} {
    %c0 = arith.constant 0 : index
    %0 = memref.load %arg2[%c0] : memref<1xf32, #tpu.memory_space<smem>>
    %c0_0 = arith.constant 0 : index
    %1 = memref.load %arg3[%c0_0] : memref<1xf32, #tpu.memory_space<smem>>
    %c0_1 = arith.constant 0 : index
    %c0_2 = arith.constant 0 : index
    %2 = vector.load %arg4[%c0_1, %c0_2] : memref<64x128xf32, #tpu.memory_space<vmem>>, vector<64x128xf32>
    %3 = vector.broadcast %0 : f32 to vector<64x128xf32>
    %4 = arith.mulf %3, %2 : vector<64x128xf32>
    %5 = vector.broadcast %1 : f32 to vector<64x128xf32>
    %6 = arith.addf %4, %5 : vector<64x128xf32>
    %c0_3 = arith.constant 0 : index
    %c0_4 = arith.constant 0 : index
    %7 = vector.load %arg5[%c0_3, %c0_4] : memref<64x128xf32, #tpu.memory_space<vmem>>, vector<64x128xf32>
    tpu.vector_store %arg5[%c0_3, %c0_4], %6 {strides = array<i32>} : memref<64x128xf32, #tpu.memory_space<vmem>>, vector<64x128xf32>,
    return
  }
  func.func @transform_0(%arg0: i32, %arg1: i32) -> i32 {
    %c0_i32 = arith.constant 0 : i32
    %c0_i32_0 = arith.constant 0 : i32
    return %c0_i32 : i32
  }
  func.func @transform_1(%arg0: i32, %arg1: i32) -> i32 {
    %c0_i32 = arith.constant 0 : i32
    %c0_i32_0 = arith.constant 0 : i32
    return %c0_i32 : i32
  }
  func.func @transform_2(%arg0: i32, %arg1: i32) -> (i32, i32) {
    %c0_i32 = arith.constant 0 : i32
    return %arg0, %arg1 : i32, i32
  }
  func.func @transform_3(%arg0: i32, %arg1: i32) -> (i32, i32) {
    %c0_i32 = arith.constant 0 : i32
    return %arg0, %arg1 : i32, i32
  }
}

</mosaic_0001>

<bundles_post_ra>
// kernel: tpu_custom_call.1
= control target key start
LH: loop header
LB: loop body
LE: loop exit
PB: predicated region body
PF: predicated region fallthrough
CT: control target
= control target key end

     0   :  { %10 = vsyncpa [#allocation5], 0  ;;  %s196_s0 = inlined_call_operand.<no memory space> [shape: f32[1], index: 0, kind: input, shape index: {}]   ;;  %s197_s1 = inlined_call_operand.<no memory space> [shape: f32[1], index: 1, kind: input, shape index: {}]   ;;  %s198_s2 = inlined_call_operand.hbm [shape: f32[64,128], index: 2, kind: input, shape index: {}]   ;;  %s199_s3 = inlined_call_operand.hbm [shape: f32[64,128], index: 3, kind: output, shape index: {}]  }
   0x1   :  { %11 = vsyncpa [#allocation6], 0  ;;  %s136_s12 = smov [#allocation4]   ;;  %s88_s16 = scalar_lea.hbm %s198_s2, 1024 }
   0x2   :  { %s21_s13 = sshll.u32 %s136_s12, 4  ;;  %p89_p0 = scmp.ne.s32.totalorder %s198_s2, %s88_s16  ;;  %s22_s13 = int_to_ptr.vmem [resolvable:$true] %s21_s13 }
   0x3   :  { %p92_p1 = scmp.lt.u32.totalorder %s88_s16, %s198_s2 }
   0x5   :  { %p94_p2 = pnand %p92_p1, %p89_p0 }
   0x7   :  { %97 = shalt.err (!%p94_p2)
}
   0x8   :  { %s98_s21 = scalar_lea.vmem %s22_s13, 1024  ;;  %p103_p4 = scmp.lt.s32.totalorder %s22_s13, %s22_s13 }
   0x9   :  { %p99_p3 = scmp.ne.s32.totalorder %s22_s13, %s98_s21  ;;  %p104_p5 = scmp.lt.s32.totalorder %s98_s21, %s98_s21 }
   0xb   :  { %p105_p6 = por %p104_p5, %p103_p4 }
   0xd   :  { %p106_p7 = pnand %p105_p6, %p99_p3 }
   0xf   :  { %109 = shalt.err (!%p106_p7)
}
  0x10   :  { %s137_s22 = smov 128   ;;  %s138_s23 = smov 8  }
  0x11   :  { %27 = dma.hbm_to_vmem [thread:$0]  %s198_s2, 1024, %s22_s13, [#allocation5], %s137_s22, %s137_s22, %s138_s23  }
  0x12   :  { %132 = dma.done.wait [#allocation5], 1024  }
  0x13   :  { %133 = vsyncadd [#allocation5], 4294966272  ;;  %v41_v0 = vstv %s196_s0  ;;  %v33_v1 = vld [vmem:[#allocation4] sm:$0xff]  ;;  %v50_v2 = vstv %s197_s1  ;;  %v34_v3 = vld [vmem:[#allocation4 + $0x8] sm:$0xff]  ;;  %s139_s0 = smov [#allocation7]  }
  0x14   :  { %v35_v4 = vld [vmem:[#allocation4 + $0x10] sm:$0xff]  ;;  %v42_v5 = vmul.f32 %v41_v0, %v33_v1  ;;  %v43_v6 = vmul.f32 %v41_v0, %v34_v3  ;;  %v36_v8 = vld [vmem:[#allocation4 + $0x18] sm:$0xff]  ;;  %v37_v9 = vld [vmem:[#allocation4 + $0x20] sm:$0xff]  ;;  %s72_s2 = sshll.u32 %s139_s0, 4  ;;  %s73_s2 = int_to_ptr.vmem [resolvable:$true] %s72_s2 }
  0x15   :  { %v44_v7 = vmul.f32 %v41_v0, %v35_v4  ;;  %v38_v10 = vld [vmem:[#allocation4 + $0x28] sm:$0xff]  ;;  %v45_v11 = vmul.f32 %v41_v0, %v36_v8  ;;  %v46_v12 = vmul.f32 %v41_v0, %v37_v9  ;;  %v39_v14 = vld [vmem:[#allocation4 + $0x30] sm:$0xff]  ;;  %v40_v15 = vld [vmem:[#allocation4 + $0x38] sm:$0xff]  ;;  %s110_s1 = scalar_lea.vmem %s73_s2, 1024  ;;  %p115_p9 = scmp.lt.s32.totalorder %s73_s2, %s73_s2 }
  0x16   :  { %v47_v13 = vmul.f32 %v41_v0, %v38_v10  ;;  %v51_v16 = vadd.f32 %v50_v2, %v42_v5  ;;  %v52_v17 = vadd.f32 %v50_v2, %v43_v6  ;;  %v48_v19 = vmul.f32 %v41_v0, %v39_v14  ;;  %p111_p8 = scmp.ne.s32.totalorder %s73_s2, %s110_s1  ;;  %p116_p10 = scmp.lt.s32.totalorder %s110_s1, %s110_s1 }
  0x17   :  { %v53_v18 = vadd.f32 %v50_v2, %v44_v7  ;;  %v54_v20 = vadd.f32 %v50_v2, %v45_v11  ;;  %v55_v21 = vadd.f32 %v50_v2, %v46_v12  ;;  %v49_v23 = vmul.f32 %v41_v0, %v40_v15 }
  0x18   :  { %v56_v22 = vadd.f32 %v50_v2, %v47_v13  ;;  %59 = vst [vmem:[#allocation7] sm:$0xff] %v51_v16  ;;  %60 = vst [vmem:[#allocation7 + $0x8] sm:$0xff] %v52_v17  ;;  %v57_v24 = vadd.f32 %v50_v2, %v48_v19  ;;  %p117_p11 = por %p116_p10, %p115_p9 }
  0x19   :  { %61 = vst [vmem:[#allocation7 + $0x10] sm:$0xff] %v53_v18  ;;  %62 = vst [vmem:[#allocation7 + $0x18] sm:$0xff] %v54_v20  ;;  %v58_v25 = vadd.f32 %v50_v2, %v49_v23 }
  0x1a   :  { %63 = vst [vmem:[#allocation7 + $0x20] sm:$0xff] %v55_v21  ;;  %64 = vst [vmem:[#allocation7 + $0x28] sm:$0xff] %v56_v22  ;;  %p118_p12 = pnand %p117_p11, %p111_p8 }
  0x1b   :  { %65 = vst [vmem:[#allocation7 + $0x30] sm:$0xff] %v57_v24  ;;  %66 = vst [vmem:[#allocation7 + $0x38] sm:$0xff] %v58_v25 }
  0x1c   :  { %121 = shalt.err (!%p118_p12)
}
  0x1d   :  { %s122_s5 = scalar_lea.hbm %s199_s3, 1024 }
  0x1e   :  { %p123_p13 = scmp.ne.s32.totalorder %s199_s3, %s122_s5  ;;  %p126_p0 = scmp.lt.u32.totalorder %s122_s5, %s199_s3 }
  0x20   :  { %p128_p1 = pnand %p126_p0, %p123_p13 }
  0x22   :  { %131 = shalt.err (!%p128_p1)
}
  0x23   :  { %78 = dma.vmem_to_hbm [thread:$0]  %s73_s2, 1024, %s199_s3, [#allocation6], %s137_s22, %s137_s22, %s138_s23  }
  0x24   :  { %134 = dma.done.wait [#allocation6], 1024  }
  0x25   :  { %135 = vsyncadd [#allocation6], 4294966272 }
  0x26   :  { %82 = vsyncpa [#allocation5], 1 }
  0x27   :  { %83 = vsyncpa [#allocation6], 1 }

</bundles_post_ra>
